<compile_context>
chip_gen: v6e
topology: v6e:2x2x1
jax: 0.10.0
libtpu: 0.0.40
codegen_flags: <defaults>
</compile_context>

<pallas_src>
import functools

import jax
import jax.numpy as jnp
import numpy as np
from jax import lax
from jax.experimental import pallas as pl
from jax.experimental.pallas import tpu as pltpu

BN_EPS = 1e-5
_MIB = 1024 * 1024


# ----------------------------------------------------------------------------
# Small static helpers (run at trace time)
# ----------------------------------------------------------------------------
def _vmem_limit(nbytes):
    """Clamp an explicit scoped-VMEM request to a range safe on v5e/v6e/v7x."""
    return int(min(max(nbytes, 16 * _MIB), 56 * _MIB))


def _divisors(n):
    return [d for d in range(1, n + 1) if n % d == 0]


def _pick_batch_tile(batch, per_sample_bytes, budget_bytes):
    """Largest batch tile fitting the VMEM budget, preferring >=2 grid steps on
    the batch axis so v7x megacore sharding has work on both TensorCores."""
    fits = [d for d in _divisors(batch) if d * per_sample_bytes <= budget_bytes]
    if not fits:
        return 1
    multi = [d for d in fits if batch // d >= 2]
    return max(multi) if multi else max(fits)


def _pick_row_chunk(oh, ow, wr, cout, budget_bytes):
    """Row chunk TR for pass 2.  Layout-valid chunks are TR == OH, or chunks whose
    lane extents (TR*Wr in, TR*OW out) are multiples of 128."""
    best = oh
    for tr in _divisors(oh):
        if tr != oh and ((tr * ow) % 128 != 0 or (tr * wr) % 128 != 0):
            continue
        if 4 * cout * tr * (wr + ow) <= budget_bytes:
            best = tr
    return best


# ----------------------------------------------------------------------------
# Pass 1: conv as ONE tap-stacked matmul per sample + single-pass BN/gate moments
# ----------------------------------------------------------------------------
def conv_stats_kernel(x_ref, w_ref, mask_ref, y_ref, stats_ref, *,
                      offsets, npad, inv_nvalid, tb):
    """TB samples per grid step.

    x_ref    : (TB, Cin, L)         zero-padded, row-flattened input (row stride Wr)
    w_ref    : (Cout, KH*KW*Cin)    tap-stacked conv weight (constant index_map)
    mask_ref : (1, NPAD)            1.0 on valid columns, 0.0 on flat-shift junk cols
    y_ref    : (TB, Cout, NPAD)     conv output on the padded row grid (lane-dense)
    stats_ref: (TB, Cin+2*Cout, 1)  packed [x chan sums | y chan sums | centered y SSQ]
    """
    w = w_ref[...]
    mask = mask_ref[...]
    for t in range(tb):                              # TB is small and static
        x = x_ref[t]                                 # (Cin, L), VMEM-resident
        # Tap-stacked operand: lane-shifted slices concatenated along sublanes
        # (XLU slot, overlaps MXU) -> one matmul instead of KH*KW tiny K=Cin
        # matmuls with per-tap VPU accumulation.
        xs = jnp.concatenate([x[:, off:off + npad] for off in offsets], axis=0)
        y = jnp.dot(w, xs, preferred_element_type=jnp.float32)   # (Cout, NPAD)
        y_ref[t] = y                                  # store straight, no extra acc

        # Single-pass BN moments, centered at the per-sample mean (combined with
        # Chan's formula in the wrapper) -> no E[y^2]-E[y]^2 cancellation.  The
        # junk-column mask is a precomputed input: no per-step iota/mod VPU work.
        yv = y * mask
        ysum = jnp.sum(yv, axis=1, keepdims=True)                 # (Cout, 1)
        d = (y - ysum * inv_nvalid) * mask
        yssq = jnp.sum(d * d, axis=1, keepdims=True)              # (Cout, 1)
        xsum = jnp.sum(x, axis=1, keepdims=True)                  # (Cin, 1)  zeros add 0
        # One packed store per sample instead of three tiny DMAs.
        stats_ref[t] = jnp.concatenate([xsum, ysum, yssq], axis=0)


# ----------------------------------------------------------------------------
# Pass 2: fused (BatchNorm + beta) * gate + ReLU epilogue, lane-dense output
# ----------------------------------------------------------------------------
def bn_gate_relu_kernel(y_ref, scale_ref, shift_ref, out_ref, *, tr, wr, ow):
    """y_ref: (TB2, Cout, TR*Wr)  scale/shift: (TB2, Cout, 1)  out: (TB2, Cout, TR*OW).

    The TR valid row windows are compacted along the lane axis so the output
    store is one unmasked lane-dense slab (no OW-wide vst.msk tail stores)."""
    y = y_ref[...]
    if ow == wr:
        z = y
    else:
        z = jnp.concatenate([y[:, :, r * wr:r * wr + ow] for r in range(tr)], axis=-1)
    out_ref[...] = jnp.maximum(z * scale_ref[...] + shift_ref[...], 0.0)


# ----------------------------------------------------------------------------
# Wrapper
# ----------------------------------------------------------------------------
@functools.partial(jax.jit, static_argnames=("stride", "padding"))
def gated_conv2d_forward(x_nchw, conv_w, gate_w, gate_b, beta, *, stride=1, padding=0):
    """Forward pass of GatedConv2d (training-mode BN, unprunedRatio == 1.0).

    x_nchw : (B, Cin, H, W)   conv_w : (Cout, Cin, KH, KW)
    gate_w : (Cout, Cin)      gate_b : (Cout,)   beta : (Cout,)
    Returns (out (B, Cout, OH, OW) in NCHW, E_g_x scalar).
    """
    if stride != 1:
        # TODO(synk): stride > 1 path (strided lane reads via pl.ds(..., stride)) not implemented.
        raise NotImplementedError("Pallas GatedConv2d path currently supports stride == 1.")

    B, Cin, H, W = x_nchw.shape
    Cout, _, KH, KW = conv_w.shape
    Hp, Wr = H + 2 * padding, W + 2 * padding
    OH, OW = Hp - KH + 1, Wr - KW + 1
    NPAD = OH * Wr                      # padded row grid: OW valid + (Wr-OW) junk cols per row
    L = Hp * Wr + (KW - 1)              # tail zeros keep junk-column reads in bounds
    K2 = KH * KW
    S = Cin + 2 * Cout

    x32 = x_nchw.astype(jnp.float32)
    # Only wrapper-side data movement: spatial zero-pad + row flatten (no transpose / im2col).
    xp = jnp.pad(x32, ((0, 0), (0, 0), (padding, padding), (padding, padding)))
    xflat = jnp.pad(xp.reshape(B, Cin, Hp * Wr), ((0, 0), (0, 0), (0, KW - 1)))

    # Tap-stacked conv weight: column (kh*KW + kw)*Cin + ci matches the in-kernel
    # concatenation order of the shifted slices.
    w_stack = jnp.transpose(conv_w, (0, 2, 3, 1)).reshape(Cout, K2 * Cin).astype(jnp.float32)
    offsets = tuple(kh * Wr + kw for kh in range(KH) for kw in range(KW))

    # Junk-column mask for the flat-shift row grid, hoisted out of the kernel.
    mask = (jnp.arange(NPAD, dtype=jnp.int32) % Wr < OW).astype(jnp.float32).reshape(1, NPAD)

    # ---- pass 1: conv + single-pass moments, batch-tiled, explicit VMEM budget ----
    per_sample1 = 4 * (Cin * L + Cout * NPAD + S)              # HBM-backed blocks / sample
    work1 = 4 * (K2 * Cin + 2 * Cout) * NPAD                   # stacked operand + y temps
    TB = _pick_batch_tile(B, per_sample1 + work1, 6 * _MIB)
    fixed1 = 4 * (Cout * K2 * Cin + NPAD)                      # weights + mask
    vmem1 = _vmem_limit(2 * (TB * per_sample1 + fixed1) + TB * work1 + 2 * _MIB)

    kernel1 = functools.partial(conv_stats_kernel, offsets=offsets, npad=NPAD,
                                inv_nvalid=1.0 / float(OH * OW), tb=TB)
    y_pad, stats = pl.pallas_call(
        kernel1,
        grid=(B // TB,),
        in_specs=[
            pl.BlockSpec((TB, Cin, L), lambda b: (b, 0, 0)),
            pl.BlockSpec((Cout, K2 * Cin), lambda b: (0, 0)),
            pl.BlockSpec((1, NPAD), lambda b: (0, 0)),
        ],
        out_specs=[
            pl.BlockSpec((TB, Cout, NPAD), lambda b: (b, 0, 0)),
            pl.BlockSpec((TB, S, 1), lambda b: (b, 0, 0)),
        ],
        out_shape=[
            jax.ShapeDtypeStruct((B, Cout, NPAD), jnp.float32),
            jax.ShapeDtypeStruct((B, S, 1), jnp.float32),
        ],
        compiler_params=pltpu.CompilerParams(
            dimension_semantics=("parallel",),
            vmem_limit_bytes=vmem1),
    )(xflat, w_stack, mask)
    # TODO(synk): bf16 matmul operands / bf16 y_pad intermediate (v6e/v7x MXU rate,
    # v5e HBM round trip) would ~halve traffic but breaks the 1e-4 f32 validation.
    # TODO(synk): very large Cin*H*W needs an OH-row-chunk grid axis (overlapping
    # row windows) in pass 1; not required at these shapes.

    st = stats[:, :, 0]                                         # (B, Cin+2*Cout)
    xsum = st[:, :Cin]
    ysum = st[:, Cin:Cin + Cout]
    yssq = st[:, Cin + Cout:]

    # Gate: relu(Linear(avg_pool(x))) from the pass-1 channel sums (x read from HBM once).
    ss = xsum / float(H * W)                                    # (B, Cin)
    gates = jnp.maximum(ss @ gate_w.astype(jnp.float32).T
                        + gate_b.astype(jnp.float32), 0.0)      # (B, Cout)
    e_g_x = jnp.mean(jnp.sum(gates, axis=1))
    # TODO(synk): unprunedRatio < 1.0 (zeroing the top-k smallest gates) not implemented;
    # the module's default config uses unprunedRatio == 1.0 (no pruning).

    # Training-mode BatchNorm2d(affine=False): biased batch stats via Chan's parallel
    # combine of per-sample centered moments (numerically stable).
    n = float(OH * OW)
    cnt = float(B) * n
    mean_b = ysum / n                                           # (B, Cout)
    mean = jnp.sum(ysum, axis=0) / cnt                          # (Cout,)
    m2 = jnp.sum(yssq, axis=0) + n * jnp.sum((mean_b - mean[None, :]) ** 2, axis=0)
    var = jnp.maximum(m2 / cnt, 0.0)
    inv = lax.rsqrt(var + BN_EPS)
    # Fold ((y - mean)*inv + beta) * gates into one per-(b, cout) affine.
    scale = (gates * inv[None, :]).reshape(B, Cout, 1)
    shift = (gates * (beta.astype(jnp.float32)[None, :]
                      - mean[None, :] * inv[None, :])).reshape(B, Cout, 1)

    # ---- pass 2: lane-dense fused epilogue, tiled over (batch, row-chunks) ----
    TR = _pick_row_chunk(OH, OW, Wr, Cout, 3 * _MIB)
    per_sample2 = 4 * Cout * (TR * Wr + TR * OW + 2)
    TB2 = _pick_batch_tile(B, per_sample2, 4 * _MIB)
    vmem2 = _vmem_limit(4 * TB2 * per_sample2 + 2 * _MIB)

    kernel2 = functools.partial(bn_gate_relu_kernel, tr=TR, wr=Wr, ow=OW)
    out_flat = pl.pallas_call(
        kernel2,
        grid=(B // TB2, OH // TR),
        in_specs=[
            pl.BlockSpec((TB2, Cout, TR * Wr), lambda b, r: (b, 0, r)),
            pl.BlockSpec((TB2, Cout, 1), lambda b, r: (b, 0, 0)),
            pl.BlockSpec((TB2, Cout, 1), lambda b, r: (b, 0, 0)),
        ],
        out_specs=pl.BlockSpec((TB2, Cout, TR * OW), lambda b, r: (b, 0, r)),
        out_shape=jax.ShapeDtypeStruct((B, Cout, OH * OW), jnp.float32),
        compiler_params=pltpu.CompilerParams(
            dimension_semantics=("parallel", "parallel"),
            vmem_limit_bytes=vmem2),
    )(y_pad, scale, shift)

    out = out_flat.reshape(B, Cout, OH, OW)      # metadata-only reshape back to NCHW
    return out, e_g_x


# ----------------------------------------------------------------------------
# Pure-JAX reference (mirrors the PyTorch module, training-mode BN)
# ----------------------------------------------------------------------------
def reference_forward(x_nchw, conv_w, gate_w, gate_b, beta, *, stride, padding):
    ss = jnp.mean(x_nchw, axis=(2, 3))                              # (B, Cin)
    gates = jnp.maximum(ss @ gate_w.T + gate_b, 0.0)                # (B, Cout)
    egx = jnp.mean(jnp.sum(gates, axis=1))
    y = lax.conv_general_dilated(
        x_nchw, conv_w, window_strides=(stride, stride),
        padding=[(padding, padding), (padding, padding)],
        dimension_numbers=("NCHW", "OIHW", "NCHW"))
    mean = jnp.mean(y, axis=(0, 2, 3), keepdims=True)
    var = jnp.mean((y - mean) ** 2, axis=(0, 2, 3), keepdims=True)
    out = (y - mean) * lax.rsqrt(var + BN_EPS) + beta[None, :, None, None]
    out = out * gates[:, :, None, None]
    return jnp.maximum(out, 0.0), egx


if __name__ == "__main__":
    # Small config: batch=2, inChannels=4, outChannels=8, 16x16, k=3, s=1, p=1
    B, Cin, H, W = 2, 4, 16, 16
    Cout, KH, KW = 8, 3, 3
    stride, padding = 1, 1

    key = jax.random.PRNGKey(0)
    k_x, k_cw, k_gw = jax.random.split(key, 3)

    x = jax.random.normal(k_x, (B, Cin, H, W), jnp.float32)
    conv_w = jax.random.normal(k_cw, (Cout, Cin, KH, KW), jnp.float32) * 0.1
    gate_w = jax.random.normal(k_gw, (Cout, Cin), jnp.float32) * 0.1
    gate_b = jnp.ones((Cout,), jnp.float32)      # module fills gate bias with 1.0
    beta = jnp.ones((Cout,), jnp.float32)        # self.beta = ones(outChannels)

    out, egx = gated_conv2d_forward(x, conv_w, gate_w, gate_b, beta,
                                    stride=stride, padding=padding)
    out = jax.block_until_ready(out)
    egx = jax.block_until_ready(egx)

    ref_out, ref_egx = reference_forward(x, conv_w, gate_w, gate_b, beta,
                                         stride=stride, padding=padding)
    np.testing.assert_allclose(np.asarray(out), np.asarray(ref_out),
                               rtol=1e-4, atol=2e-4)
    np.testing.assert_allclose(float(egx), float(ref_egx), rtol=1e-4, atol=1e-4)

    print("KERNEL_OK")
</pallas_src>

<mosaic_0001>
module attributes {stable_mosaic.version = 11 : i64} {
  func.func @conv_stats_kernel(%arg0: i32, %arg1: memref<1x4x326xf32, #tpu.memory_space<vmem>>, %arg2: memref<8x36xf32, #tpu.memory_space<vmem>>, %arg3: memref<1x288xf32, #tpu.memory_space<vmem>>, %arg4: memref<1x8x288xf32, #tpu.memory_space<vmem>>, %arg5: memref<1x20x1xf32, #tpu.memory_space<vmem>>) attributes {dimension_semantics = [#tpu.dimension_semantics<parallel>], iteration_bounds = array<i64: 2>, scalar_prefetch = 0 : i64, scratch_operands = 0 : i64, tpu.core_type = #tpu.core_type<tc>, window_params = [{transform_indices = @transform_0, window_bounds = array<i64: 1, 4, 326>}, {pipeline_mode = #tpu.pipeline_mode<synchronous>, transform_indices = @transform_1, window_bounds = array<i64: 8, 36>}, {pipeline_mode = #tpu.pipeline_mode<synchronous>, transform_indices = @transform_2, window_bounds = array<i64: 1, 288>}, {transform_indices = @transform_3, window_bounds = array<i64: 1, 8, 288>}, {transform_indices = @transform_4, window_bounds = array<i64: 1, 20, 1>}]} {
    %c0 = arith.constant 0 : index
    %c0_0 = arith.constant 0 : index
    %0 = vector.load %arg2[%c0, %c0_0] : memref<8x36xf32, #tpu.memory_space<vmem>>, vector<8x36xf32>
    %c0_1 = arith.constant 0 : index
    %c0_2 = arith.constant 0 : index
    %1 = vector.load %arg3[%c0_1, %c0_2] : memref<1x288xf32, #tpu.memory_space<vmem>>, vector<1x288xf32>
    %c0_3 = arith.constant 0 : index
    %c0_4 = arith.constant 0 : index
    %c0_5 = arith.constant 0 : index
    %2 = vector.load %arg1[%c0_3, %c0_4, %c0_5] : memref<1x4x326xf32, #tpu.memory_space<vmem>>, vector<1x4x326xf32>
    %3 = vector.shape_cast %2 : vector<1x4x326xf32> to vector<4x326xf32>
    %4 = vector.extract_strided_slice %3 {offsets = [0, 0], sizes = [4, 288], strides = [1, 1]} : vector<4x326xf32> to vector<4x288xf32>
    %5 = vector.extract_strided_slice %3 {offsets = [0, 1], sizes = [4, 288], strides = [1, 1]} : vector<4x326xf32> to vector<4x288xf32>
    %6 = vector.extract_strided_slice %3 {offsets = [0, 2], sizes = [4, 288], strides = [1, 1]} : vector<4x326xf32> to vector<4x288xf32>
    %7 = vector.extract_strided_slice %3 {offsets = [0, 18], sizes = [4, 288], strides = [1, 1]} : vector<4x326xf32> to vector<4x288xf32>
    %8 = vector.extract_strided_slice %3 {offsets = [0, 19], sizes = [4, 288], strides = [1, 1]} : vector<4x326xf32> to vector<4x288xf32>
    %9 = vector.extract_strided_slice %3 {offsets = [0, 20], sizes = [4, 288], strides = [1, 1]} : vector<4x326xf32> to vector<4x288xf32>
    %10 = vector.extract_strided_slice %3 {offsets = [0, 36], sizes = [4, 288], strides = [1, 1]} : vector<4x326xf32> to vector<4x288xf32>
    %11 = vector.extract_strided_slice %3 {offsets = [0, 37], sizes = [4, 288], strides = [1, 1]} : vector<4x326xf32> to vector<4x288xf32>
    %12 = vector.extract_strided_slice %3 {offsets = [0, 38], sizes = [4, 288], strides = [1, 1]} : vector<4x326xf32> to vector<4x288xf32>
    %13 = tpu.concatenate %4, %5, %6, %7, %8, %9, %10, %11, %12 in 0 : vector<4x288xf32>, vector<4x288xf32>, vector<4x288xf32>, vector<4x288xf32>, vector<4x288xf32>, vector<4x288xf32>, vector<4x288xf32>, vector<4x288xf32>, vector<4x288xf32> -> vector<36x288xf32>
    %cst = arith.constant dense<0.000000e+00> : vector<8x288xf32>
    %14 = tpu.matmul %0, %13, %cst {dimension_numbers = #tpu.dot_dimension_numbers<[1], [0], [0], [1], [0, 0, 1, 1], [], []>} : vector<8x36xf32>, vector<36x288xf32>, vector<8x288xf32> -> vector<8x288xf32>
    %c0_6 = arith.constant 0 : index
    %c0_7 = arith.constant 0 : index
    %c0_8 = arith.constant 0 : index
    %15 = vector.load %arg4[%c0_6, %c0_7, %c0_8] : memref<1x8x288xf32, #tpu.memory_space<vmem>>, vector<1x8x288xf32>
    %16 = vector.shape_cast %15 : vector<1x8x288xf32> to vector<8x288xf32>
    %17 = vector.shape_cast %14 : vector<8x288xf32> to vector<1x8x288xf32>
    tpu.vector_store %arg4[%c0_6, %c0_7, %c0_8], %17 {strides = array<i32>} : memref<1x8x288xf32, #tpu.memory_space<vmem>>, vector<1x8x288xf32>,
    %18 = vector.broadcast %1 : vector<1x288xf32> to vector<8x288xf32>
    %19 = arith.mulf %14, %18 : vector<8x288xf32>
    %cst_9 = arith.constant dense<0.000000e+00> : vector<8xf32>
    %20 = vector.multi_reduction <add>, %19, %cst_9 [1] : vector<8x288xf32> to vector<8xf32>
    %21 = vector.shape_cast %20 : vector<8xf32> to vector<8x1xf32>
    %cst_10 = arith.constant 3.906250e-03 : f32
    %22 = vector.broadcast %cst_10 : f32 to vector<8x1xf32>
    %23 = arith.mulf %21, %22 : vector<8x1xf32>
    %24 = vector.broadcast %23 : vector<8x1xf32> to vector<8x288xf32>
    %25 = arith.subf %14, %24 : vector<8x288xf32>
    %26 = vector.broadcast %1 : vector<1x288xf32> to vector<8x288xf32>
    %27 = arith.mulf %25, %26 : vector<8x288xf32>
    %28 = arith.mulf %27, %27 : vector<8x288xf32>
    %cst_11 = arith.constant dense<0.000000e+00> : vector<8xf32>
    %29 = vector.multi_reduction <add>, %28, %cst_11 [1] : vector<8x288xf32> to vector<8xf32>
    %30 = vector.shape_cast %29 : vector<8xf32> to vector<8x1xf32>
    %cst_12 = arith.constant dense<0.000000e+00> : vector<4xf32>
    %31 = vector.multi_reduction <add>, %3, %cst_12 [1] : vector<4x326xf32> to vector<4xf32>
    %32 = vector.shape_cast %31 : vector<4xf32> to vector<4x1xf32>
    %33 = tpu.concatenate %32, %21, %30 in 0 : vector<4x1xf32>, vector<8x1xf32>, vector<8x1xf32> -> vector<20x1xf32>
    %c0_13 = arith.constant 0 : index
    %c0_14 = arith.constant 0 : index
    %c0_15 = arith.constant 0 : index
    %34 = vector.load %arg5[%c0_13, %c0_14, %c0_15] : memref<1x20x1xf32, #tpu.memory_space<vmem>>, vector<1x20x1xf32>
    %35 = vector.shape_cast %34 : vector<1x20x1xf32> to vector<20x1xf32>
    %36 = vector.shape_cast %33 : vector<20x1xf32> to vector<1x20x1xf32>
    tpu.vector_store %arg5[%c0_13, %c0_14, %c0_15], %36 {strides = array<i32>} : memref<1x20x1xf32, #tpu.memory_space<vmem>>, vector<1x20x1xf32>,
    return
  }
  func.func @transform_0(%arg0: i32) -> (i32, i32, i32) {
    %c0_i32 = arith.constant 0 : i32
    %c0_i32_0 = arith.constant 0 : i32
    %c0_i32_1 = arith.constant 0 : i32
    return %arg0, %c0_i32, %c0_i32_0 : i32, i32, i32
  }
  func.func @transform_1(%arg0: i32) -> (i32, i32) {
    %c0_i32 = arith.constant 0 : i32
    %c0_i32_0 = arith.constant 0 : i32
    %c0_i32_1 = arith.constant 0 : i32
    return %c0_i32, %c0_i32_0 : i32, i32
  }
  func.func @transform_2(%arg0: i32) -> (i32, i32) {
    %c0_i32 = arith.constant 0 : i32
    %c0_i32_0 = arith.constant 0 : i32
    %c0_i32_1 = arith.constant 0 : i32
    return %c0_i32, %c0_i32_0 : i32, i32
  }
  func.func @transform_3(%arg0: i32) -> (i32, i32, i32) {
    %c0_i32 = arith.constant 0 : i32
    %c0_i32_0 = arith.constant 0 : i32
    %c0_i32_1 = arith.constant 0 : i32
    return %arg0, %c0_i32, %c0_i32_0 : i32, i32, i32
  }
  func.func @transform_4(%arg0: i32) -> (i32, i32, i32) {
    %c0_i32 = arith.constant 0 : i32
    %c0_i32_0 = arith.constant 0 : i32
    %c0_i32_1 = arith.constant 0 : i32
    return %arg0, %c0_i32, %c0_i32_0 : i32, i32, i32
  }
}

module attributes {stable_mosaic.version = 11 : i64} {
  func.func @bn_gate_relu_kernel(%arg0: i32, %arg1: i32, %arg2: memref<1x8x288xf32, #tpu.memory_space<vmem>>, %arg3: memref<1x8x1xf32, #tpu.memory_space<vmem>>, %arg4: memref<1x8x1xf32, #tpu.memory_space<vmem>>, %arg5: memref<1x8x256xf32, #tpu.memory_space<vmem>>) attributes {dimension_semantics = [#tpu.dimension_semantics<parallel>, #tpu.dimension_semantics<parallel>], iteration_bounds = array<i64: 2, 1>, scalar_prefetch = 0 : i64, scratch_operands = 0 : i64, tpu.core_type = #tpu.core_type<tc>, window_params = [{transform_indices = @transform_0, window_bounds = array<i64: 1, 8, 288>}, {transform_indices = @transform_1, window_bounds = array<i64: 1, 8, 1>}, {transform_indices = @transform_2, window_bounds = array<i64: 1, 8, 1>}, {transform_indices = @transform_3, window_bounds = array<i64: 1, 8, 256>}]} {
    %c0 = arith.constant 0 : index
    %c0_0 = arith.constant 0 : index
    %c0_1 = arith.constant 0 : index
    %0 = vector.load %arg2[%c0, %c0_0, %c0_1] : memref<1x8x288xf32, #tpu.memory_space<vmem>>, vector<1x8x288xf32>
    %1 = vector.extract_strided_slice %0 {offsets = [0, 0, 0], sizes = [1, 8, 16], strides = [1, 1, 1]} : vector<1x8x288xf32> to vector<1x8x16xf32>
    %2 = vector.extract_strided_slice %0 {offsets = [0, 0, 18], sizes = [1, 8, 16], strides = [1, 1, 1]} : vector<1x8x288xf32> to vector<1x8x16xf32>
    %3 = vector.extract_strided_slice %0 {offsets = [0, 0, 36], sizes = [1, 8, 16], strides = [1, 1, 1]} : vector<1x8x288xf32> to vector<1x8x16xf32>
    %4 = vector.extract_strided_slice %0 {offsets = [0, 0, 54], sizes = [1, 8, 16], strides = [1, 1, 1]} : vector<1x8x288xf32> to vector<1x8x16xf32>
    %5 = vector.extract_strided_slice %0 {offsets = [0, 0, 72], sizes = [1, 8, 16], strides = [1, 1, 1]} : vector<1x8x288xf32> to vector<1x8x16xf32>
    %6 = vector.extract_strided_slice %0 {offsets = [0, 0, 90], sizes = [1, 8, 16], strides = [1, 1, 1]} : vector<1x8x288xf32> to vector<1x8x16xf32>
    %7 = vector.extract_strided_slice %0 {offsets = [0, 0, 108], sizes = [1, 8, 16], strides = [1, 1, 1]} : vector<1x8x288xf32> to vector<1x8x16xf32>
    %8 = vector.extract_strided_slice %0 {offsets = [0, 0, 126], sizes = [1, 8, 16], strides = [1, 1, 1]} : vector<1x8x288xf32> to vector<1x8x16xf32>
    %9 = vector.extract_strided_slice %0 {offsets = [0, 0, 144], sizes = [1, 8, 16], strides = [1, 1, 1]} : vector<1x8x288xf32> to vector<1x8x16xf32>
    %10 = vector.extract_strided_slice %0 {offsets = [0, 0, 162], sizes = [1, 8, 16], strides = [1, 1, 1]} : vector<1x8x288xf32> to vector<1x8x16xf32>
    %11 = vector.extract_strided_slice %0 {offsets = [0, 0, 180], sizes = [1, 8, 16], strides = [1, 1, 1]} : vector<1x8x288xf32> to vector<1x8x16xf32>
    %12 = vector.extract_strided_slice %0 {offsets = [0, 0, 198], sizes = [1, 8, 16], strides = [1, 1, 1]} : vector<1x8x288xf32> to vector<1x8x16xf32>
    %13 = vector.extract_strided_slice %0 {offsets = [0, 0, 216], sizes = [1, 8, 16], strides = [1, 1, 1]} : vector<1x8x288xf32> to vector<1x8x16xf32>
    %14 = vector.extract_strided_slice %0 {offsets = [0, 0, 234], sizes = [1, 8, 16], strides = [1, 1, 1]} : vector<1x8x288xf32> to vector<1x8x16xf32>
    %15 = vector.extract_strided_slice %0 {offsets = [0, 0, 252], sizes = [1, 8, 16], strides = [1, 1, 1]} : vector<1x8x288xf32> to vector<1x8x16xf32>
    %16 = vector.extract_strided_slice %0 {offsets = [0, 0, 270], sizes = [1, 8, 16], strides = [1, 1, 1]} : vector<1x8x288xf32> to vector<1x8x16xf32>
    %17 = tpu.concatenate %1, %2, %3, %4, %5, %6, %7, %8, %9, %10, %11, %12, %13, %14, %15, %16 in 2 : vector<1x8x16xf32>, vector<1x8x16xf32>, vector<1x8x16xf32>, vector<1x8x16xf32>, vector<1x8x16xf32>, vector<1x8x16xf32>, vector<1x8x16xf32>, vector<1x8x16xf32>, vector<1x8x16xf32>, vector<1x8x16xf32>, vector<1x8x16xf32>, vector<1x8x16xf32>, vector<1x8x16xf32>, vector<1x8x16xf32>, vector<1x8x16xf32>, vector<1x8x16xf32> -> vector<1x8x256xf32>
    %c0_2 = arith.constant 0 : index
    %c0_3 = arith.constant 0 : index
    %c0_4 = arith.constant 0 : index
    %18 = vector.load %arg3[%c0_2, %c0_3, %c0_4] : memref<1x8x1xf32, #tpu.memory_space<vmem>>, vector<1x8x1xf32>
    %19 = vector.broadcast %18 : vector<1x8x1xf32> to vector<1x8x256xf32>
    %20 = arith.mulf %17, %19 : vector<1x8x256xf32>
    %c0_5 = arith.constant 0 : index
    %c0_6 = arith.constant 0 : index
    %c0_7 = arith.constant 0 : index
    %21 = vector.load %arg4[%c0_5, %c0_6, %c0_7] : memref<1x8x1xf32, #tpu.memory_space<vmem>>, vector<1x8x1xf32>
    %22 = vector.broadcast %21 : vector<1x8x1xf32> to vector<1x8x256xf32>
    %23 = arith.addf %20, %22 : vector<1x8x256xf32>
    %cst = arith.constant 0.000000e+00 : f32
    %24 = vector.broadcast %cst : f32 to vector<1x8x256xf32>
    %25 = arith.maximumf %23, %24 : vector<1x8x256xf32>
    %c0_8 = arith.constant 0 : index
    %c0_9 = arith.constant 0 : index
    %c0_10 = arith.constant 0 : index
    %26 = vector.load %arg5[%c0_8, %c0_9, %c0_10] : memref<1x8x256xf32, #tpu.memory_space<vmem>>, vector<1x8x256xf32>
    tpu.vector_store %arg5[%c0_8, %c0_9, %c0_10], %25 {strides = array<i32>} : memref<1x8x256xf32, #tpu.memory_space<vmem>>, vector<1x8x256xf32>,
    return
  }
  func.func @transform_0(%arg0: i32, %arg1: i32) -> (i32, i32, i32) {
    %c0_i32 = arith.constant 0 : i32
    %c0_i32_0 = arith.constant 0 : i32
    return %arg0, %c0_i32, %arg1 : i32, i32, i32
  }
  func.func @transform_1(%arg0: i32, %arg1: i32) -> (i32, i32, i32) {
    %c0_i32 = arith.constant 0 : i32
    %c0_i32_0 = arith.constant 0 : i32
    %c0_i32_1 = arith.constant 0 : i32
    return %arg0, %c0_i32, %c0_i32_0 : i32, i32, i32
  }
  func.func @transform_2(%arg0: i32, %arg1: i32) -> (i32, i32, i32) {
    %c0_i32 = arith.constant 0 : i32
    %c0_i32_0 = arith.constant 0 : i32
    %c0_i32_1 = arith.constant 0 : i32
    return %arg0, %c0_i32, %c0_i32_0 : i32, i32, i32
  }
  func.func @transform_3(%arg0: i32, %arg1: i32) -> (i32, i32, i32) {
    %c0_i32 = arith.constant 0 : i32
    %c0_i32_0 = arith.constant 0 : i32
    return %arg0, %c0_i32, %arg1 : i32, i32, i32
  }
}

</mosaic_0001>

<bundles_post_ra>
// kernel: gated_conv2d_forward.3
= control target key start
LH: loop header
LB: loop body
LE: loop exit
PB: predicated region body
PF: predicated region fallthrough
CT: control target
= control target key end

     0   :  { %s571_s12 = smov 0   ;;  %s573_s13 = smov 0   ;;  %s623_s0 = inlined_call_operand.vmem [shape: f32[2,8,288], index: 0, kind: input, shape index: {}]   ;;  %s624_s1 = inlined_call_operand.vmem [shape: f32[2,8,1], index: 1, kind: input, shape index: {}]   ;;  %s625_s2 = inlined_call_operand.vmem [shape: f32[2,8,1], index: 2, kind: input, shape index: {}]   ;;  %s626_s3 = inlined_call_operand.vmem [shape: f32[2,8,256], index: 3, kind: output, shape index: {}]  }
   0x1   :  { %s575_s14 = smov 0  }
   0x2 LB: > { %s25_s15 = sadd.s32 1, %s529_s13  ;;  %p459_p0 = scmp.ge.s32.totalorder %s533_s14, 1  ;;  %s533_s14 = sphi %s575_s14, %s13_s14   ;;  %s529_s13 = sphi %s573_s13, %s628_s13   ;;  %s525_s12 = sphi %s571_s12, %s627_s12  }
   0x3   : > { %p27_p1 = scmp.ge.s32.totalorder %s25_s15, 2  ;;  %p176_p2 = scmp.lt.s32.totalorder %s533_s14, 3 }
   0x5   : > { %s630_s15 = smov (%p27_p1, %s25_s15), 0  ;;  %p177_p3 = pnand %p459_p0, %p176_p2 }
   0x6   : > { %p217_p4 = scmp.lt.s32.totalorder (!%p177_p3), %s525_s12, 1  ;;  %s536_s20 = smov (!%p177_p3), 110  }
   0x7   : > { %180 = sbr.rel (%p177_p3) target bundleno = 185 (0xb9), region = 32  ;;  %s537_s21 = smov (!%p177_p3), 126  }
   0x8   : > { %s538_s23 = smov (!%p177_p3), 124   ;;  %s539_s24 = smov (!%p177_p3), 112  }
   0x9   : > { %s540_s28 = smov (!%p177_p3), 122   ;;  %s541_s29 = smov (!%p177_p3), 108  }
   0xa   : > { %s542_s30 = smov (!%p177_p3), 106   ;;  %s543_s4 = smov (!%p177_p3), 120  }
   0xb   : > { %s544_s5 = smov (!%p177_p3), 104   ;;  %s545_s6 = smov (!%p177_p3), 118  }
   0xc   : > { %v535_v0 = vmov 0   ;;  %s632_s12 = smov (!%p217_p4, %s525_s12), 1  ;;  %s546_s7 = smov 102   ;;  %vm303_vm0 = vcmask 130048   ;;  %vm305_vm1 = vcmask 261120   ;;  %vm307_vm2 = vcmask 392192  }
   0xd   : > { %509 = vset.pattern.permute.xlu1 %v535_v0  ;;  %510 = vset.pattern.permute.xlu0 %v535_v0  ;;  %s468_s16 = smul.u32 24, %s632_s12  ;;  %s461_s22 = sshll.u32 %s632_s12, 3  ;;  %vm309_vm3 = vcmask 523264   ;;  %vm311_vm4 = vcmask 654336   ;;  %vm297_vm5 = vcmask 818176   ;;  %vm271_vm6 = vcmask 932864  }
   0xe   : > { %s229_s27 = scalar_lea.vmem %s624_s1, %s461_s22  ;;  %s233_s10 = scalar_lea.vmem %s625_s2, %s461_s22  ;;  %vm315_vm7 = vcmask 916480   ;;  %vm313_vm8 = vcmask 785408  }
   0xf   : > { %s224_s19 = scalar_lea.vmem %s623_s0, %s468_s16  ;;  %v324_v3 = vld [vmem:[%s229_s27] sm:$0xff]  ;;  %s547_s11 = smov 100  }
  0x10   : > { %v245_v1 = vld [vmem:[%s224_s19 + $0x8] sm:$0xff]  ;;  %v244_v2 = vld [vmem:[%s224_s19] sm:$0xff]  ;;  %v246_v4 = vld [vmem:[%s224_s19 + $0x10] sm:$0xff]  ;;  %s548_s16 = smov 116   ;;  %s549_s17 = smov 114  }
  0x11   : > { %277 = vrot.lane.b32.xlu1 %v245_v1, %s536_s20  ;;  %248 = vrot.lane.b32.xlu0 %v244_v2, %s537_s21  ;;  %v332_v5 = vld [vmem:[%s233_s10] sm:$0xff]  ;;  %s550_s18 = smov 98   ;;  %s467_s19 = sshll.u32 %s632_s12, 4 }
  0x12   : > { %s242_s22 = scalar_lea.vmem %s626_s3, %s467_s19 }
  0x15   : > { %251 = vrot.lane.b32.xlu1 %v244_v2, %s538_s23  ;;  %274 = vrot.lane.b32.xlu0 %v245_v1, %s539_s24 }
  0x19   : > { %254 = vrot.lane.b32.xlu1 %v244_v2, %s540_s28  ;;  %280 = vrot.lane.b32.xlu0 %v245_v1, %s541_s29 }
  0x1d   : > { %327 = vperm.xlu1 %509, %v324_v3   ;;  %283 = vrot.lane.b32.xlu0 %v245_v1, %s542_s30 }
  0x21   : > { %257 = vrot.lane.b32.xlu0 %v244_v2, %s543_s4  ;;  %286 = vrot.lane.b32.xlu1 %v245_v1, %s544_s5 }
  0x25   : > { %260 = vrot.lane.b32.xlu0 %v244_v2, %s545_s6  ;;  %289 = vrot.lane.b32.xlu1 %v245_v1, %s546_s7 }
  0x29   : > { %293 = vrot.lane.b32.xlu0 %v245_v1, %s547_s11  ;;  %295 = vrot.lane.b32.xlu1 %v246_v4, %s547_s11 }
  0x2d   : > { %335 = vperm.xlu0 %510, %v332_v5   ;;  %263 = vrot.lane.b32.xlu1 %v244_v2, %s548_s16 }
  0x31   : > { %267 = vrot.lane.b32.xlu1 %v244_v2, %s549_s17  ;;  %269 = vrot.lane.b32.xlu0 %v245_v1, %s549_s17 }
  0x35   : > { %300 = vrot.lane.b32.xlu1 %v246_v4, %s550_s18 }
  0x83   : > { %v249_v6 = vpop.permute.xlu0 %248  ;;  %v278_v7 = vpop.permute.xlu1 %277 }
  0x84   : > { %v304_v20 = vsel %vm303_vm0, %v244_v2, %v249_v6 }
  0x87   : > { %v275_v8 = vpop.permute.xlu0 %274  ;;  %v252_v9 = vpop.permute.xlu1 %251 }
  0x88   : > { %v306_v23 = vsel %vm305_vm1, %v304_v20, %v252_v9  ;;  %v317_v25 = vsel %vm303_vm0, %v275_v8, %v278_v7 }
  0x8b   : > { %v281_v10 = vpop.permute.xlu0 %280  ;;  %v255_v11 = vpop.permute.xlu1 %254 }
  0x8c   : > { %v308_v24 = vsel %vm307_vm2, %v306_v23, %v255_v11  ;;  %v318_v27 = vsel %vm305_vm1, %v317_v25, %v281_v10 }
  0x8f   : > { %v284_v12 = vpop.permute.xlu0 %283 }
  0x90   : > { %v319_v31 = vsel %vm307_vm2, %v318_v27, %v284_v12 }
  0x93   : > { %v258_v14 = vpop.permute.xlu0 %257 }
  0x94   : > { %v310_v26 = vsel %vm309_vm3, %v308_v24, %v258_v14 }
  0x97   : > { %v261_v16 = vpop.permute.xlu0 %260 }
  0x98   : > { %v328_v13 = vpop.permute.xlu1 %327  ;;  %v312_v28 = vsel %vm311_vm4, %v310_v26, %v261_v16 }
  0x9b   : > { %v294_v18 = vpop.permute.xlu0 %293 }
  0x9c   : > { %v287_v15 = vpop.permute.xlu1 %286 }
  0x9d   : > { %v320_v35 = vsel %vm309_vm3, %v319_v31, %v287_v15 }
  0xa0   : > { %v290_v17 = vpop.permute.xlu1 %289 }
  0xa1   : > { %v321_v37 = vsel %vm311_vm4, %v320_v35, %v290_v17 }
  0xa4   : > { %v296_v19 = vpop.permute.xlu1 %295 }
  0xa5   : > { %v298_v32 = vsel %vm297_vm5, %v294_v18, %v296_v19 }
  0xa6   : > { %v322_v40 = vsel %vm313_vm8, %v321_v37, %v298_v32 }
  0xa8   : > { %v264_v21 = vpop.permute.xlu1 %263  ;;  %v336_v22 = vpop.permute.xlu0 %335 }
  0xa9   : > { %v314_v33 = vsel %vm313_vm8, %v312_v28, %v264_v21 }
  0xac   : > { %v268_v29 = vpop.permute.xlu1 %267  ;;  %v270_v30 = vpop.permute.xlu0 %269 }
  0xad   : > { %v272_v34 = vsel %vm271_vm6, %v268_v29, %v270_v30 }
  0xae   : > { %v316_v36 = vsel %vm315_vm7, %v314_v33, %v272_v34 }
  0xaf   : > { %v330_v38 = vmul.f32 %v328_v13, %v316_v36 }
  0xb0   : > { %v301_v39 = vpop.permute.xlu1 %300 }
  0xb1   : > { %v338_v41 = vadd.f32 %v336_v22, %v330_v38  ;;  %v323_v42 = vsel %vm315_vm7, %v322_v40, %v301_v39 }
  0xb2   : > { %v331_v43 = vmul.f32 %v328_v13, %v323_v42 }
  0xb3   : > { %v340_v44 = vmax.f32 %v338_v41, 0.0 }
  0xb4   : > { %v339_v45 = vadd.f32 %v336_v22, %v331_v43 }
  0xb5   : > { %342 = vst [vmem:[%s242_s22] sm:$0xff] %v340_v44 }
  0xb6   : > { %v341_v46 = vmax.f32 %v339_v45, 0.0 }
  0xb8   : > { %343 = vst [vmem:[%s242_s22 + $0x8] sm:$0xff] %v341_v46 }
  0xb9 PF: > { %s13_s14 = sadd.s32 1, %s533_s14   ;;  %s627_s12 = smov %s529_s13 }
  0xba   : > { %p10_p5 = scmp.ge.s32.totalorder %s13_s14, 4   ;;  %s628_s13 = smov %s630_s15 }
  0xbc   :  { %12 = sbr.rel (!%p10_p5) target bundleno = 2 (0x2), region = 68 }

// kernel: gated_conv2d_forward.2
= control target key start
LH: loop header
LB: loop body
LE: loop exit
PB: predicated region body
PF: predicated region fallthrough
CT: control target
= control target key end

     0   :  { %s730_s15 = smov 0   ;;  %s831_s0 = inlined_call_operand.vmem [shape: f32[2,4,326], index: 0, kind: input, shape index: {}]   ;;  %s832_s1 = inlined_call_operand.vmem [shape: f32[8,36], index: 1, kind: input, shape index: {}]   ;;  %s833_s2 = inlined_call_operand.vmem [shape: f32[1,288], index: 2, kind: input, shape index: {}]   ;;  %s834_s3 = inlined_call_operand.vmem [shape: f32[2,8,288], index: 3, kind: output, shape index: {0}]   ;;  %s835_s4 = inlined_call_operand.vmem [shape: f32[2,20,1], index: 4, kind: output, shape index: {1}]  }
   0x1 LB: > { %s630_s16 = sadd.s32 4294967295, %s693_s15   ;;  %p634_p0 = scmp.ge.s32.totalorder %s693_s15, 1  ;;  %s693_s15 = sphi %s730_s15, %s15_s15  }
   0x2   : > { %p165_p1 = scmp.lt.s32.totalorder %s693_s15, 3 }
   0x4   : > { %p166_p2 = pnand %p634_p0, %p165_p1 }
   0x5   : > { %p196_p3 = scmp.lt.s32.totalorder (!%p166_p2), %s630_s16, 1  ;;  %s696_s21 = smov (!%p166_p2), 92  }
   0x6   : > { %169 = sbr.rel (%p166_p2) target bundleno = 672 (0x2a0), region = 32  ;;  %s697_s22 = smov (!%p166_p2), 90  }
   0x7   : > { %s698_s23 = smov (!%p166_p2), 91   ;;  %s699_s24 = smov (!%p166_p2), 109  }
   0x8   : > { %s700_s25 = smov (!%p166_p2), 108   ;;  %s701_s26 = smov (!%p166_p2), 126  }
   0x9   : > { %s702_s27 = smov (!%p166_p2), 110   ;;  %s704_s28 = smov (!%p166_p2), 127  }
   0xb   : > { %v695_v0 = vmov 0.0   ;;  %s837_s16 = smov (!%p196_p3, %s630_s16), 1  ;;  %vm703_vm0 = vmmov 0   ;;  %vm314_vm1 = vcmask 1043456   ;;  %vm311_vm2 = vcmask 736256   ;;  %v211_v53 = vld [vmem:[%s832_s1] sm:$0xff] }
   0xc   : > { %651 = vmatprep.subr.mxu1 %v695_v0  ;;  %401 = vmatprep.mubr.f32.mxu0 %v695_v0  ;;  %s664_s17 = smul.u32 12, %s837_s16  ;;  %vm299_vm3 = vcmask 744448   ;;  %vm287_vm4 = vcmask 752640   ;;  %vm263_vm5 = vcmask 891904   ;;  %vm275_vm6 = vcmask 883712  }
   0xd   : > { %661 = vmatprep.mubr.msk.f32.mxu1 %vm703_vm0, %v695_v0  ;;  %vm239_vm7 = vcmask 1031168   ;;  %vm251_vm8 = vcmask 900096   ;;  %vm227_vm9 = vcmask 1039360   ;;  %vm327_vm10 = vcmask 293888   ;;  %s665_s5 = smul.u32 24, %s837_s16 }
   0xe   : > { %s200_s20 = scalar_lea.vmem %s831_s0, %s664_s17  ;;  %v483_v59 = vlaneseq  ;;  %v212_v62 = vld [vmem:[%s833_s2] sm:$0x7]  ;;  %vm480_vm11 = vcmask 261120   ;;  %vm524_vm12 = vcmask 568320   ;;  %vm537_vm13 = vcmask 7168  }
   0xf   : > { %v746_v1 = vld [vmem:[%s200_s20 + $0x8] sm:$0xf]  ;;  %v748_v2 = vld [vmem:[%s200_s20] sm:$0xff]  ;;  %s205_s10 = scalar_lea.vmem %s834_s3, %s665_s5  ;;  %s210_s13 = scalar_lea.vmem %s835_s4, %s665_s5  ;;  %vm540_vm14 = vcmask 3072  }
  0x10   : > { %285 = vrot.lane.b32.xlu1 %v746_v1, %s696_s21  ;;  %309 = vrot.lane.b32.xlu0 %v746_v1, %s697_s22  ;;  %v754_v3 = vcombine.high %v748_v2, %v748_v2  ;;  %v220_v4 = vcombine.low %v746_v1, %v746_v1  ;;  %v219_v5 = vcombine.low %v748_v2, %v748_v2  ;;  %v484_v60 = vshrl.u32 %v483_v59, 7 }
  0x12   : > { %v493_v61 = vsub.s32 2, %v484_v60  ;;  %v485_v63 = vsub.s32 0, %v484_v60 }
  0x14   : > { %295 = vrot.lane.b32.xlu0 %v748_v2, %s698_s23  ;;  %283 = vrot.lane.b32.xlu1 %v754_v3, %s696_s21 }
  0x18   : > { %297 = vrot.lane.b32.xlu1 %v220_v4, %s698_s23  ;;  %307 = vrot.lane.b32.xlu0 %v754_v3, %s697_s22 }
  0x1c   : > { %281 = vrot.lane.b32.xlu1 %v748_v2, %s696_s21  ;;  %305 = vrot.lane.b32.xlu0 %v748_v2, %s697_s22 }
  0x20   : > { %259 = vrot.lane.b32.xlu1 %v754_v3, %s699_s24  ;;  %293 = vrot.lane.b32.xlu0 %v219_v5, %s698_s23 }
  0x24   : > { %271 = vrot.lane.b32.xlu1 %v748_v2, %s700_s25  ;;  %261 = vrot.lane.b32.xlu0 %v746_v1, %s699_s24 }
  0x28   : > { %257 = vrot.lane.b32.xlu1 %v748_v2, %s699_s24  ;;  %273 = vrot.lane.b32.xlu0 %v220_v4, %s700_s25 }
  0x2c   : > { %235 = vrot.lane.b32.xlu1 %v754_v3, %s701_s26  ;;  %269 = vrot.lane.b32.xlu0 %v219_v5, %s700_s25 }
  0x30   : > { %247 = vrot.lane.b32.xlu1 %v748_v2, %s702_s27  ;;  %237 = vrot.lane.b32.xlu0 %v746_v1, %s701_s26 }
  0x34   : > { %233 = vrot.lane.b32.xlu1 %v748_v2, %s701_s26  ;;  %249 = vrot.lane.b32.xlu0 %v220_v4, %s702_s27 }
  0x38   : > { %223 = vrot.lane.b32.xlu1 %v748_v2, %s704_s28  ;;  %245 = vrot.lane.b32.xlu0 %v219_v5, %s702_s27 }
  0x3c   : > { %221 = vrot.lane.b32.xlu1 %v219_v5, %s704_s28  ;;  %225 = vrot.lane.b32.xlu0 %v220_v4, %s704_s28  ;;  %v494_v4 = vrot.slane %v212_v62, %v493_v61 }
  0x82   : > { %v286_v6 = vpop.permute.xlu1 %285  ;;  %v310_v7 = vpop.permute.xlu0 %309 }
  0x83   : > { %652 = vmatpush3.msk.msra.mxu1 %vm314_vm1, %v310_v7 }
  0x84   : > { %653 = vmatprep.subr.mxu1 %v695_v0 }
  0x86   : > { %v296_v8 = vpop.permute.xlu0 %295  ;;  %v284_v9 = vpop.permute.xlu1 %283 }
  0x87   : > { %v289_v17 = vsel %vm287_vm4, %v284_v9, %v286_v6 }
  0x8a   : > { %v298_v10 = vpop.permute.xlu1 %297  ;;  %v308_v11 = vpop.permute.xlu0 %307 }
  0x8b   : > { %v313_v12 = vsel %vm311_vm2, %v308_v11, %v310_v7  ;;  %v326_v13 = vsel %vm314_vm1, %v286_v6, %v298_v10  ;;  %v301_v14 = vsel %vm299_vm3, %v296_v8, %v298_v10  ;;  %v486_v6 = vrot.slane %v212_v62, %v485_v63 }
  0x8c   : > { %638 = vmatprep.subr.msk.mxu0 %vm314_vm1, %v313_v12  ;;  %654 = vmatpush3.msra.mxu1 %v326_v13  ;;  %v325_v19 = vsel %vm314_vm1, %v289_v17, %v301_v14  ;;  %v521_v12 = vsel %vm314_vm1, %v748_v2, 0.0  ;;  %v522_v13 = vsel %vm314_vm1, %v754_v3, 0.0 }
  0x8d   : > { %655 = vmatprep.subr.mxu1 %v695_v0 }
  0x8e   : > { %v282_v15 = vpop.permute.xlu1 %281  ;;  %v306_v16 = vpop.permute.xlu0 %305 }
  0x8f   : > { %v312_v18 = vsel %vm311_vm2, %v306_v16, %v308_v11  ;;  %v288_v22 = vsel %vm287_vm4, %v282_v15, %v284_v9 }
  0x90   : > { %639 = vmatpush1.msk.msra.mxu0 %vm314_vm1, %v312_v18  ;;  %v523_v18 = vadd.f32 %v522_v13, %v521_v12 }
  0x91   : > { %361 = vmatprep.subr.mxu0 %v325_v19  ;;  %v525_v19 = vsel %vm524_vm12, %v746_v1, 0.0 }
  0x92   : > { %v260_v20 = vpop.permute.xlu1 %259  ;;  %v294_v21 = vpop.permute.xlu0 %293 }
  0x93   : > { %v300_v23 = vsel %vm299_vm3, %v294_v21, %v296_v8  ;;  %v526_v21 = vadd.f32 %v525_v19, %v523_v18 }
  0x94   : > { %v324_v24 = vsel %vm314_vm1, %v288_v22, %v300_v23 }
  0x95   : > { %362 = vmatpush1.msra.mxu0 %v324_v24 }
  0x96   : > { %v272_v25 = vpop.permute.xlu1 %271  ;;  %v262_v26 = vpop.permute.xlu0 %261 }
  0x97   : > { %v265_v29 = vsel %vm263_vm5, %v260_v20, %v262_v26 }
  0x9a   : > { %v258_v27 = vpop.permute.xlu1 %257  ;;  %v274_v28 = vpop.permute.xlu0 %273 }
  0x9b   : > { %v277_v30 = vsel %vm275_vm6, %v272_v25, %v274_v28  ;;  %v323_v31 = vsel %vm314_vm1, %v262_v26, %v274_v28  ;;  %v264_v35 = vsel %vm263_vm5, %v258_v27, %v260_v20 }
  0x9c   : > { %656 = vmatpush3.msra.mxu1 %v323_v31  ;;  %v322_v32 = vsel %vm314_vm1, %v265_v29, %v277_v30 }
  0x9d   : > { %363 = vmatprep.subr.mxu0 %v322_v32  ;;  %657 = vmatprep.subr.mxu1 %v695_v0 }
  0x9e   : > { %v236_v33 = vpop.permute.xlu1 %235  ;;  %v270_v34 = vpop.permute.xlu0 %269 }
  0x9f   : > { %v276_v36 = vsel %vm275_vm6, %v270_v34, %v272_v25 }
  0xa0   : > { %v321_v37 = vsel %vm314_vm1, %v264_v35, %v276_v36 }
  0xa1   : > { %364 = vmatpush1.msra.mxu0 %v321_v37 }
  0xa2   : > { %v248_v38 = vpop.permute.xlu1 %247  ;;  %v238_v39 = vpop.permute.xlu0 %237 }
  0xa3   : > { %v241_v42 = vsel %vm239_vm7, %v236_v33, %v238_v39 }
  0xa6   : > { %v234_v40 = vpop.permute.xlu1 %233  ;;  %v250_v41 = vpop.permute.xlu0 %249 }
  0xa7   : > { %v253_v43 = vsel %vm251_vm8, %v248_v38, %v250_v41  ;;  %v320_v44 = vsel %vm314_vm1, %v238_v39, %v250_v41  ;;  %v240_v48 = vsel %vm239_vm7, %v234_v40, %v236_v33 }
  0xa8   : > { %658 = vmatpush3.msra.mxu1 %v320_v44  ;;  %v319_v45 = vsel %vm314_vm1, %v241_v42, %v253_v43 }
  0xa9   : > { %365 = vmatprep.subr.mxu0 %v319_v45  ;;  %659 = vmatprep.subr.mxu1 %v695_v0  ;;  %v489_v0 = vsub.s32 1, %v484_v60 }
  0xaa   : > { %v224_v46 = vpop.permute.xlu1 %223  ;;  %v246_v47 = vpop.permute.xlu0 %245 }
  0xab   : > { %v252_v49 = vsel %vm251_vm8, %v246_v47, %v248_v38  ;;  %v490_v7 = vrot.slane %v212_v62, %v489_v0 }
  0xac   : > { %v318_v50 = vsel %vm314_vm1, %v240_v48, %v252_v49 }
  0xad   : > { %366 = vmatpush1.msra.mxu0 %v318_v50 }
  0xae   : > { %v222_v51 = vpop.permute.xlu1 %221  ;;  %v226_v52 = vpop.permute.xlu0 %225 }
  0xaf   : > { %v228_v54 = vsel %vm227_vm9, %v222_v51, %v224_v46  ;;  %v229_v55 = vsel %vm227_vm9, %v224_v46, %v226_v52  ;;  %v317_v56 = vsel %vm314_vm1, %v746_v1, %v226_v52 }
  0xb0   : > { %660 = vmatpush3.msra.mxu1 %v317_v56  ;;  %v316_v57 = vsel %vm314_vm1, %v754_v3, %v229_v55  ;;  %v315_v58 = vsel %vm314_vm1, %v748_v2, %v228_v54 }
  0xb1   : > { %367 = vmatprep.subr.mxu0 %v316_v57  ;;  %662 = vmatmul.mubr.msk.f32.vlgmr.msra.gmra.mxu1 %vm327_vm10, %v211_v53 }
  0xb2   : > { %368 = vmatpush1.msra.mxu0 %v315_v58 }
  0xb3   : > { %640 = vmatmul.mubr.msk.f32.vlgmr.msra.gmra.mxu0 %vm327_vm10, %v211_v53 }
 0x171   : > { %v474_v5 = vpop.f32.mrf.mxu1 }
 0x172   : > { %481 = vst.msk [vmem:[%s205_s10 + $0x10] sm:$0xff] %vm480_vm11, %v474_v5  ;;  %v500_v9 = vmul.f32 %v494_v4, %v474_v5 }
 0x173   : > { %v403_v8 = vpop.f32.mrf.mxu0  ;;  %v663_v10 = vpop.f32.mrf.mxu1 }
 0x174   : > { %478 = vst [vmem:[%s205_s10] sm:$0xff] %v403_v8  ;;  %v498_v14 = vmul.f32 %v486_v6, %v403_v8  ;;  %v502_v16 = vsel %vm480_vm11, %v500_v9, 0.0 }
 0x175   : > { %v405_v11 = vpop.f32.mrf.mxu0 }
 0x176   : > { %479 = vst [vmem:[%s205_s10 + $0x8] sm:$0xff] %v405_v11  ;;  %v499_v15 = vmul.f32 %v490_v7, %v405_v11 }
 0x178   : > { %v501_v17 = vadd.f32 %v499_v15, %v498_v14 }
 0x17a   : > { %v503_v20 = vadd.f32 %v502_v16, %v501_v17 }
 0x17c   : > { %504 = vadd.xlane.f32.xlu0 %v503_v20 }
 0x180   : > { %527 = vadd.xlane.f32.xlu0 %v526_v21 }
 0x205   : > { %v505_v22 = vpop.xlane.xlu0 %504 }
 0x206   : > { %v506_v2 = vmul.f32 0.00390625, %v505_v22  ;;  %v530_v25 = vrot.slane %v505_v22, 4 }
 0x208   : > { %v507_v23 = vsub.f32 %v403_v8, %v506_v2  ;;  %v508_v3 = vsub.f32 %v405_v11, %v506_v2  ;;  %v509_v24 = vsub.f32 %v474_v5, %v506_v2 }
 0x209   : > { %v528_v26 = vpop.xlane.xlu0 %527 }
 0x20a   : > { %v535_v27 = vsel %vm314_vm1, %v528_v26, %v530_v25  ;;  %v510_v1 = vmul.f32 %v507_v23, %v486_v6  ;;  %v511_v28 = vmul.f32 %v508_v3, %v490_v7  ;;  %v512_v29 = vmul.f32 %v509_v24, %v494_v4 }
 0x20b   : > { %538 = vst.msk [vmem:[%s210_s13] sm:$0xff] %vm537_vm13, %v535_v27 }
 0x20c   : > { %v513_v30 = vmul.f32 %v510_v1, %v510_v1  ;;  %v514_v31 = vmul.f32 %v511_v28, %v511_v28  ;;  %v515_v32 = vmul.f32 %v512_v29, %v512_v29 }
 0x20e   : > { %v516_v33 = vadd.f32 %v514_v31, %v513_v30  ;;  %v517_v34 = vsel %vm480_vm11, %v515_v32, 0.0 }
 0x210   : > { %v518_v35 = vadd.f32 %v517_v34, %v516_v33 }
 0x212   : > { %519 = vadd.xlane.f32.xlu1 %v518_v35 }
 0x29b   : > { %v520_v36 = vpop.xlane.xlu1 %519 }
 0x29c   : > { %v533_v37 = vrot.slane %v520_v36, 4 }
 0x29e   : > { %v536_v38 = vsel %vm314_vm1, %v530_v25, %v533_v37  ;;  %541 = vst.msk [vmem:[%s210_s13 + $0x10] sm:$0xf] %vm540_vm14, %v533_v37 }
 0x29f   : > { %539 = vst.msk [vmem:[%s210_s13 + $0x8] sm:$0xff] %vm537_vm13, %v536_v38 }
 0x2a0 PF: > { %s15_s15 = sadd.s32 1, %s693_s15  }
 0x2a1   : > { %p12_p4 = scmp.ge.s32.totalorder %s15_s15, 4  }
 0x2a3   :  { %14 = sbr.rel (!%p12_p4) target bundleno = 1 (0x1), region = 74 }

</bundles_post_ra>
